<compile_context>
chip_gen: v7x
topology: tpu7x:2x2x1
jax: 0.10.0
libtpu: 0.0.40
codegen_flags: <defaults>
</compile_context>

<pallas_src>
from functools import partial

import jax
import jax.numpy as jnp
from jax.experimental import pallas as pl
from jax.experimental.pallas import tpu as pltpu


def _round_up(x, m):
    return ((x + m - 1) // m) * m


def _maml_predict_kernel(x_ref, w_ref, o_ref):
    # x_ref: (k_pad, tile_n) transposed features, x_ref[k, i] == X_train[i, k]
    # w_ref: (k_pad, out_dim) zero-padded weights (padded rows are zero -> inert)
    # o_ref: (out_dim, tile_n) lane-dense Y_predict^T block
    x = x_ref[...]
    w = w_ref[...]
    out_dim = w.shape[1]
    if out_dim == 1:
        # VPU multiply (lane-broadcast of the single weight column)
        # + XLU cross-sublane reduce. No MXU pipe-fill for a 1-column result.
        o_ref[...] = jnp.sum(x * w, axis=0, keepdims=True)
    elif out_dim <= 8:
        # Skinny output: per-column VPU multiply + sublane reduce beats paying
        # MXU fill/drain for a handful of columns (MXU tile is 128/256 wide).
        cols = [
            jnp.sum(x * w[:, m : m + 1], axis=0, keepdims=True)
            for m in range(out_dim)
        ]
        o_ref[...] = jnp.concatenate(cols, axis=0)
    else:
        # Genuinely wide output: contract K on the MXU; result stays lane-dense.
        o_ref[...] = jax.lax.dot_general(
            w, x, (((0,), (0,)), ((), ())), preferred_element_type=jnp.float32
        )


@partial(jax.jit, static_argnames=("n_sample",))
def maml_model_forward(key, W, n_sample):
    """Reproduces MamlModel.forward(): returns (Y_train, Y_predict)."""
    input_dim, out_dim = W.shape
    k_pad = _round_up(input_dim, 8)                       # sublane-aligned K
    tile_n = min(2048, _round_up(max(n_sample, 1), 128))  # lane-dense sample tile
    n_pad = _round_up(max(n_sample, 1), tile_n)
    grid = (n_pad // tile_n,)

    kx, ky = jax.random.split(key)

    # Transposed + padded feature matrix: x_t[k, i] == X_train[i, k].
    # Rows >= input_dim multiply zero-padded W rows, columns >= n_sample are
    # sliced away -> padding is inert.
    x_t = jax.random.uniform(kx, (k_pad, n_pad), dtype=jnp.float32)

    # Y_train ~ Bernoulli(0.5), shape (n_sample, 1); does not need the kernel.
    y_train = (
        jax.random.bernoulli(ky, 0.5, (max(n_sample, 1),))
        .astype(jnp.float32)[:n_sample]
        .reshape(-1, 1)
    )

    # Zero-pad W along K; padded rows contribute nothing to the contraction.
    w_pad = (
        jnp.zeros((k_pad, out_dim), jnp.float32)
        .at[:input_dim, :]
        .set(W.astype(jnp.float32))
    )

    y_pred_t = pl.pallas_call(
        _maml_predict_kernel,
        out_shape=jax.ShapeDtypeStruct((out_dim, n_pad), jnp.float32),
        grid=grid,
        in_specs=[
            pl.BlockSpec((k_pad, tile_n), lambda i: (0, i)),   # X^T tile
            pl.BlockSpec((k_pad, out_dim), lambda i: (0, 0)),  # full W (resident)
        ],
        out_specs=pl.BlockSpec((out_dim, tile_n), lambda i: (0, i)),
        compiler_params=pltpu.CompilerParams(
            dimension_semantics=("parallel",)
        ),
    )(x_t, w_pad)

    if out_dim == 1:
        # Lane-dense kernel output; just slice row 0 (no transpose in the wrapper).
        Y_predict = y_pred_t[0, :n_sample].reshape(-1, 1)
    else:
        # (out_dim, n) -> (n, out_dim) -> row-major (-1, 1), matching torch.reshape(-1, 1).
        Y_predict = y_pred_t[:, :n_sample].T.reshape(-1, 1)
    return y_train, Y_predict


if __name__ == "__main__":
    input_dim = 50
    out_dim = 1
    n_sample = 8

    key = jax.random.PRNGKey(0)

    # Deterministic parameter init matching nn.Parameter(torch.zeros(...)).
    W_zeros = jnp.zeros((input_dim, out_dim), dtype=jnp.float32)
    Y_train, Y_predict = maml_model_forward(key, W_zeros, n_sample)
    jax.block_until_ready((Y_train, Y_predict))

    assert Y_train.shape == (n_sample, 1)
    assert Y_predict.shape == (n_sample * out_dim, 1)
    # Y_train is Bernoulli -> values in {0, 1}.
    assert bool(jnp.all((Y_train == 0.0) | (Y_train == 1.0)))
    # With W = zeros, prediction must be exactly zero.
    assert bool(jnp.all(Y_predict == 0.0))

    # Sanity check the contraction path with a non-zero W (same key -> same samples).
    W_ones = jnp.ones((input_dim, out_dim), dtype=jnp.float32)
    Y_train2, Y_predict2 = maml_model_forward(key, W_ones, n_sample)
    jax.block_until_ready((Y_train2, Y_predict2))
    # Same key -> identical labels across calls.
    assert bool(jnp.all(Y_train2 == Y_train))
    # Each prediction is a sum of 50 U(0,1) values -> inside [0, 50].
    assert bool(jnp.all((Y_predict2 >= 0.0) & (Y_predict2 <= float(input_dim))))

    print("KERNEL_OK")
</pallas_src>

<mosaic_0001>
module attributes {stable_mosaic.version = 11 : i64} {
  func.func @_maml_predict_kernel(%arg0: i32, %arg1: memref<56x128xf32, #tpu.memory_space<vmem>>, %arg2: memref<56x1xf32, #tpu.memory_space<vmem>>, %arg3: memref<1x128xf32, #tpu.memory_space<vmem>>) attributes {dimension_semantics = [#tpu.dimension_semantics<parallel>], iteration_bounds = array<i64: 1>, scalar_prefetch = 0 : i64, scratch_operands = 0 : i64, tpu.core_type = #tpu.core_type<tc>, window_params = [{transform_indices = @transform_0, window_bounds = array<i64: 56, 128>}, {pipeline_mode = #tpu.pipeline_mode<synchronous>, transform_indices = @transform_1, window_bounds = array<i64: 56, 1>}, {transform_indices = @transform_2, window_bounds = array<i64: 1, 128>}]} {
    %c0 = arith.constant 0 : index
    %c0_0 = arith.constant 0 : index
    %0 = vector.load %arg1[%c0, %c0_0] : memref<56x128xf32, #tpu.memory_space<vmem>>, vector<56x128xf32>
    %c0_1 = arith.constant 0 : index
    %c0_2 = arith.constant 0 : index
    %1 = vector.load %arg2[%c0_1, %c0_2] : memref<56x1xf32, #tpu.memory_space<vmem>>, vector<56x1xf32>
    %2 = vector.broadcast %1 : vector<56x1xf32> to vector<56x128xf32>
    %3 = arith.mulf %0, %2 : vector<56x128xf32>
    %cst = arith.constant dense<0.000000e+00> : vector<128xf32>
    %4 = vector.multi_reduction <add>, %3, %cst [0] : vector<56x128xf32> to vector<128xf32>
    %5 = vector.shape_cast %4 : vector<128xf32> to vector<1x128xf32>
    %c0_3 = arith.constant 0 : index
    %c0_4 = arith.constant 0 : index
    %6 = vector.load %arg3[%c0_3, %c0_4] : memref<1x128xf32, #tpu.memory_space<vmem>>, vector<1x128xf32>
    tpu.vector_store %arg3[%c0_3, %c0_4], %5 {strides = array<i32>} : memref<1x128xf32, #tpu.memory_space<vmem>>, vector<1x128xf32>,
    return
  }
  func.func @transform_0(%arg0: i32) -> (i32, i32) {
    %c0_i32 = arith.constant 0 : i32
    %c0_i32_0 = arith.constant 0 : i32
    return %c0_i32, %arg0 : i32, i32
  }
  func.func @transform_1(%arg0: i32) -> (i32, i32) {
    %c0_i32 = arith.constant 0 : i32
    %c0_i32_0 = arith.constant 0 : i32
    %c0_i32_1 = arith.constant 0 : i32
    return %c0_i32, %c0_i32_0 : i32, i32
  }
  func.func @transform_2(%arg0: i32) -> (i32, i32) {
    %c0_i32 = arith.constant 0 : i32
    %c0_i32_0 = arith.constant 0 : i32
    return %c0_i32, %arg0 : i32, i32
  }
}

</mosaic_0001>

<bundles_post_ra>
// kernel: maml_model_forward.3
= control target key start
LH: loop header
LB: loop body
LE: loop exit
PB: predicated region body
PF: predicated region fallthrough
CT: control target
= control target key end

     0   :  { %v87_v0 = vmov 0   ;;  %s148_s1 = inlined_call_operand.vmem [shape: f32[56,1], index: 1, kind: input, shape index: {}]   ;;  %s149_s0 = inlined_call_operand.vmem [shape: f32[56,128], index: 0, kind: input, shape index: {}]   ;;  %s150_s2 = inlined_call_operand.vmem [shape: f32[1,128], index: 2, kind: output, shape index: {}]  }
   0x1   :  { %86 = vset.pattern.permute.xlu1 %v87_v0  ;;  %85 = vset.pattern.permute.xlu0 %v87_v0  ;;  %v20_v1 = vld [vmem:[%s148_s1 + $0x10] sm:$0xff]  ;;  %v18_v2 = vld [vmem:[%s148_s1] sm:$0xff]  ;;  %v21_v3 = vld [vmem:[%s148_s1 + $0x18] sm:$0xff] }
   0x2   :  { %37 = vperm.xlu1 %86, %v20_v1   ;;  %27 = vperm.xlu0 %85, %v18_v2   ;;  %v19_v4 = vld [vmem:[%s148_s1 + $0x8] sm:$0xff]  ;;  %v22_v6 = vld [vmem:[%s148_s1 + $0x20] sm:$0xff]  ;;  %v24_v7 = vld [vmem:[%s148_s1 + $0x30] sm:$0xff] }
   0x3   :  { %v23_v5 = vld [vmem:[%s148_s1 + $0x28] sm:$0xff]  ;;  %v11_v10 = vld [vmem:[%s149_s0] sm:$0xff]  ;;  %v13_v12 = vld [vmem:[%s149_s0 + $0x10] sm:$0xff] }
   0x4   :  { %v12_v11 = vld [vmem:[%s149_s0 + $0x8] sm:$0xff]  ;;  %v14_v17 = vld [vmem:[%s149_s0 + $0x18] sm:$0xff]  ;;  %v15_v21 = vld [vmem:[%s149_s0 + $0x20] sm:$0xff] }
   0x5   :  { %v16_v25 = vld [vmem:[%s149_s0 + $0x28] sm:$0xff]  ;;  %v17_v29 = vld [vmem:[%s149_s0 + $0x30] sm:$0xff] }
   0x6   :  { %42 = vperm.xlu1 %86, %v21_v3   ;;  %32 = vperm.xlu0 %85, %v19_v4  }
   0xa   :  { %52 = vperm.xlu1 %86, %v23_v5   ;;  %47 = vperm.xlu0 %85, %v22_v6  }
   0xe   :  { %57 = vperm.xlu0 %85, %v24_v7  }
  0x81   :  { %v38_v8 = vpop.permute.xlu1 %37  ;;  %v28_v9 = vpop.permute.xlu0 %27 }
  0x82   :  { %v60_v15 = vmul.f32 %v28_v9, %v11_v10  ;;  %v62_v18 = vmul.f32 %v38_v8, %v13_v12 }
  0x85   :  { %v43_v13 = vpop.permute.xlu1 %42  ;;  %v33_v14 = vpop.permute.xlu0 %32 }
  0x86   :  { %v61_v16 = vmul.f32 %v33_v14, %v12_v11  ;;  %v63_v22 = vmul.f32 %v43_v13, %v14_v17 }
  0x88   :  { %v67_v19 = vadd.f32 %v61_v16, %v60_v15 }
  0x89   :  { %v48_v20 = vpop.permute.xlu0 %47  ;;  %v53_v24 = vpop.permute.xlu1 %52 }
  0x8a   :  { %v68_v23 = vadd.f32 %v67_v19, %v62_v18  ;;  %v64_v26 = vmul.f32 %v48_v20, %v15_v21  ;;  %v65_v30 = vmul.f32 %v53_v24, %v16_v25 }
  0x8c   :  { %v69_v27 = vadd.f32 %v68_v23, %v63_v22 }
  0x8d   :  { %v58_v28 = vpop.permute.xlu0 %57 }
  0x8e   :  { %v70_v31 = vadd.f32 %v69_v27, %v64_v26  ;;  %v66_v32 = vmul.f32 %v58_v28, %v17_v29 }
  0x90   :  { %v71_v33 = vadd.f32 %v70_v31, %v65_v30 }
  0x92   :  { %v72_v34 = vadd.f32 %v71_v33, %v66_v32 }
  0x94   :  { %v73_v35 = vrot.slane %v72_v34, 4 }
  0x96   :  { %v74_v36 = vadd.f32 %v73_v35, %v72_v34 }
  0x98   :  { %v75_v37 = vrot.slane %v74_v36, 2 }
  0x9a   :  { %v76_v38 = vadd.f32 %v75_v37, %v74_v36 }
  0x9c   :  { %v77_v39 = vrot.slane %v76_v38, 1 }
  0x9e   :  { %v78_v40 = vadd.f32 %v77_v39, %v76_v38 }
  0xa0   :  { %79 = vst [vmem:[%s150_s2] sm:$0x1] %v78_v40 }

</bundles_post_ra>
